<compile_context>
chip_gen: v6e
topology: v6e:2x2x1
jax: 0.10.0
libtpu: 0.0.40
codegen_flags: <defaults>
</compile_context>

<pallas_src>
import functools

import jax
import jax.numpy as jnp
from jax.experimental import pallas as pl
from jax.experimental.pallas import tpu as pltpu


_VMEM_LIMIT = 48 * 1024 * 1024   # <= v7x 64 MiB physical, > v6e 32 MiB scoped default


# ----------------------------------------------------------------------------- #
# tile pickers
# ----------------------------------------------------------------------------- #
def _round_up(x, q):
    return (x + q - 1) // q * q


def _pick_div_tile(dim, cap, quant):
    """Largest divisor of `dim` that is a multiple of `quant` and <= cap, else full dim."""
    if dim <= cap:
        return dim
    t = (cap // quant) * quant
    while t >= quant:
        if dim % t == 0:
            return t
        t -= quant
    return dim


def _pick_k_tile(k, cap=512):
    """K tile must be full-K or a 128-multiple (lane dim of the A block)."""
    if k <= cap or k % 128 != 0:
        return k
    t = (cap // 128) * 128
    while t >= 128:
        if k % t == 0:
            return t
        t -= 128
    return k


def _pick_row_tile(m, quant, cap=512):
    """Row tile (multiple of `quant`), padded-M.  Prefers exact divisors (no pad copy),
    otherwise pads M up and the wrapper slices the tail off.  Splits into >=2 row tiles
    when cheaply possible so v7x megacore has >=2 parallel i iterations."""
    mq = _round_up(m, quant)
    if m == mq:
        tm = _pick_div_tile(m, cap, quant)
        if tm == m and m > cap:          # no divisor found -> pad instead of full-dim
            tm = cap
    else:
        tm = min(cap, mq)
    mp = _round_up(m, tm)
    if mp // tm < 2:
        half = mp // 2
        if half >= quant and half % quant == 0:
            tm = half
            mp = _round_up(m, tm)
    return tm, mp


# ----------------------------------------------------------------------------- #
# tiled matmul (+bias, +ReLU, +fused transposed 1x1-conv head, +fused softmax)
# ----------------------------------------------------------------------------- #
def _mm_kernel(*refs, relu, has_bias, fuse_head, softmax_head, k_steps):
    it = iter(refs)
    a_ref = next(it)
    b_ref = next(it)
    bias_ref = next(it) if has_bias else None
    wh_ref = next(it) if fuse_head else None
    bh_ref = next(it) if fuse_head else None
    o_ref = next(it)
    acc_ref = next(it)

    @pl.when(pl.program_id(2) == 0)
    def _init():
        acc_ref[...] = jnp.zeros_like(acc_ref)

    acc_ref[...] += jnp.dot(a_ref[...], b_ref[...],
                            preferred_element_type=jnp.float32)

    @pl.when(pl.program_id(2) == k_steps - 1)
    def _finalize():
        r = acc_ref[...]                                  # (tm, tn) f32
        if has_bias:
            r = r + bias_ref[...]                         # f32 epilogue
        if relu:
            r = jnp.maximum(r, 0.0)
        if fuse_head:
            # head result stored transposed: (nc, tm), tm (multiple of 128) on lanes.
            # out[c, m] = sum_f wh[c, f] * r[m, f]  (no explicit transposes)
            ht = jax.lax.dot_general(
                wh_ref[...], r.astype(jnp.bfloat16),
                dimension_numbers=(((1,), (1,)), ((), ())),
                preferred_element_type=jnp.float32)       # (nc, tm)
            ht = ht + bh_ref[...]                         # (nc, 1) broadcast over lanes
            if softmax_head:                              # fused TTA softmax over classes
                mx = jnp.max(ht, axis=0, keepdims=True)
                ex = jnp.exp(ht - mx)
                ht = ex / jnp.sum(ex, axis=0, keepdims=True)   # exact division
            o_ref[...] = ht.astype(o_ref.dtype)
        else:
            o_ref[...] = r.astype(o_ref.dtype)


def pallas_matmul(a, b, bias=None, relu=False, head_w=None, head_b=None,
                  softmax_head=False, out_dtype=jnp.float32):
    """act(A @ B + bias) [then transposed 1x1 head (+softmax)].  bf16 MXU, f32 accumulate.
    A: (M, K), B: (K, N), head_w: (nc, N) pre-transposed.  Fused-head output is (nc, M)."""
    a = a.astype(jnp.bfloat16)
    b = b.astype(jnp.bfloat16)
    M, K = a.shape
    K2, N = b.shape
    assert K == K2
    has_bias = bias is not None
    fuse_head = head_w is not None

    # fused head stores (nc, tm) with tm on lanes -> tm must be a 128-multiple.
    quant = 128 if fuse_head else 16
    tm, Mp = _pick_row_tile(M, quant)
    if Mp != M:
        a = jnp.pad(a, ((0, Mp - M), (0, 0)))             # padded tail, sliced off below
    tk = _pick_k_tile(K)
    k_steps = K // tk
    tn = N if fuse_head else _pick_div_tile(N, 512, 128)

    inputs = [a, b]
    in_specs = [
        pl.BlockSpec((tm, tk), lambda i, j, k: (i, k)),
        pl.BlockSpec((tk, tn), lambda i, j, k: (k, j)),
    ]
    if has_bias:
        inputs.append(jnp.asarray(bias, jnp.float32).reshape(1, N))
        in_specs.append(pl.BlockSpec((1, tn), lambda i, j, k: (0, j)))
    if fuse_head:
        nc = head_w.shape[0]
        inputs.append(head_w.astype(jnp.bfloat16))                      # (nc, N)
        inputs.append(jnp.asarray(head_b, jnp.float32).reshape(nc, 1))  # (nc, 1)
        in_specs.append(pl.BlockSpec((nc, N), lambda i, j, k: (0, 0)))
        in_specs.append(pl.BlockSpec((nc, 1), lambda i, j, k: (0, 0)))
        out_shape = jax.ShapeDtypeStruct((nc, Mp), jnp.float32)
        out_spec = pl.BlockSpec((nc, tm), lambda i, j, k: (0, i))
    else:
        out_shape = jax.ShapeDtypeStruct((Mp, N), out_dtype)
        out_spec = pl.BlockSpec((tm, tn), lambda i, j, k: (i, j))

    kernel = functools.partial(_mm_kernel, relu=relu, has_bias=has_bias,
                               fuse_head=fuse_head, softmax_head=softmax_head,
                               k_steps=k_steps)
    out = pl.pallas_call(
        kernel,
        out_shape=out_shape,
        grid=(Mp // tm, N // tn, k_steps),
        in_specs=in_specs,
        out_specs=out_spec,
        scratch_shapes=[pltpu.VMEM((tm, tn), jnp.float32)],
        compiler_params=pltpu.CompilerParams(
            dimension_semantics=("parallel", "parallel", "arbitrary"),
            vmem_limit_bytes=_VMEM_LIMIT),
    )(*inputs)

    if fuse_head:
        return out[:, :M]
    return out[:M]


# ----------------------------------------------------------------------------- #
# fused bilinear resize kernel (align_corners=True), NCHW-native, W/H on lanes
# ----------------------------------------------------------------------------- #
def _resize_kernel(x_ref, rh_ref, wm_ref, o_ref):
    img = x_ref[0]                                                        # (Hi, Wi) f32
    tmp = jnp.dot(rh_ref[...], img, preferred_element_type=jnp.float32)   # (ho_blk, Wi)
    o_ref[0] = jnp.dot(tmp, wm_ref[...], preferred_element_type=jnp.float32)


def _resize_matrix(n_in, n_out):
    """(n_out, n_in) align_corners=True linear interpolation matrix: out = M @ in."""
    if n_in == 1:
        return jnp.ones((n_out, 1), jnp.float32)
    if n_out == 1:
        return jnp.zeros((1, n_in), jnp.float32).at[0, 0].set(1.0)
    pos = jnp.arange(n_out, dtype=jnp.float32) * ((n_in - 1) / (n_out - 1))
    i0 = jnp.clip(jnp.floor(pos).astype(jnp.int32), 0, n_in - 1)
    i1 = jnp.minimum(i0 + 1, n_in - 1)
    t = pos - i0.astype(jnp.float32)
    cols = jnp.arange(n_in, dtype=jnp.int32)[None, :]
    m = (jnp.where(cols == i0[:, None], 1.0 - t[:, None], 0.0)
         + jnp.where(cols == i1[:, None], t[:, None], 0.0))
    return m.astype(jnp.float32)


def bilinear_resize_nchw(x, out_h, out_w):
    """Bilinear align_corners=True (== F.interpolate(..., 'bilinear', align_corners=True)).
    NCHW in / NCHW out.  One fused kernel: per channel image, out = RH @ img @ WM
    (exact f32, MXU), W on lanes -> lane-dense loads/stores, no layout transposes."""
    N, C, Hi, Wi = x.shape
    if (Hi, Wi) == (out_h, out_w):
        return x.astype(jnp.float32)
    B = N * C
    xb = x.reshape(B, Hi, Wi).astype(jnp.float32)
    rh = _resize_matrix(Hi, out_h)          # (Ho, Hi)
    wm = _resize_matrix(Wi, out_w).T        # (Wi, Wo)
    ho_blk = _pick_div_tile(out_h, 256, 8)
    wo_blk = _pick_div_tile(out_w, 512, 128)
    out = pl.pallas_call(
        _resize_kernel,
        out_shape=jax.ShapeDtypeStruct((B, out_h, out_w), jnp.float32),
        grid=(B, out_h // ho_blk, out_w // wo_blk),
        in_specs=[pl.BlockSpec((1, Hi, Wi), lambda b, i, j: (b, 0, 0)),
                  pl.BlockSpec((ho_blk, Hi), lambda b, i, j: (i, 0)),
                  pl.BlockSpec((Wi, wo_blk), lambda b, i, j: (0, j))],
        out_specs=pl.BlockSpec((1, ho_blk, wo_blk), lambda b, i, j: (b, i, j)),
        compiler_params=pltpu.CompilerParams(
            dimension_semantics=("parallel", "parallel", "parallel"),
            vmem_limit_bytes=_VMEM_LIMIT),
    )(xb, rh, wm)
    return out.reshape(N, C, out_h, out_w)


# ----------------------------------------------------------------------------- #
# conv building block (bf16 im2col glue + tiled Pallas matmul hot path)
# ----------------------------------------------------------------------------- #
def conv3x3_nhwc(x, w_mat, bias, stride=2, pad=1, relu=True,
                 head_w=None, head_b=None, softmax_head=False):
    """3x3 conv via bf16 im2col + tiled Pallas matmul.  w_mat: (K_pad, Cout) with
    (ki, kj, cin) row ordering (K zero-padded to K_pad).  With head_w/head_b the 1x1-conv
    head (and optional class softmax) is fused into the matmul epilogue and the result is
    returned NCHW; otherwise NHWC bf16 features are returned.
    # TODO(synk): stream the 9 taps inside the kernel instead of im2col (cuts HBM ~9x)."""
    N, H, W, Cin = x.shape
    Ho = (H + 2 * pad - 3) // stride + 1
    Wo = (W + 2 * pad - 3) // stride + 1
    xp = jnp.pad(x.astype(jnp.bfloat16), ((0, 0), (pad, pad), (pad, pad), (0, 0)))
    cols = []
    for i in range(3):
        for j in range(3):
            cols.append(xp[:, i:i + stride * (Ho - 1) + 1:stride,
                           j:j + stride * (Wo - 1) + 1:stride, :])
    patches = jnp.concatenate(cols, axis=-1).reshape(N * Ho * Wo, 9 * Cin)
    kpad = w_mat.shape[0] - 9 * Cin
    if kpad > 0:
        patches = jnp.pad(patches, ((0, 0), (0, kpad)))     # lane/sublane-friendly K

    out = pallas_matmul(patches, w_mat, bias, relu=relu,
                        head_w=head_w, head_b=head_b, softmax_head=softmax_head,
                        out_dtype=jnp.bfloat16)
    if head_w is None:
        return out.reshape(N, Ho, Wo, -1)                                  # NHWC bf16
    nc = head_w.shape[0]
    return out.reshape(nc, N, Ho, Wo).transpose(1, 0, 2, 3)                # NCHW f32


# ----------------------------------------------------------------------------- #
# BaseNet (JAX / Pallas)
# ----------------------------------------------------------------------------- #
class BaseNetPallas:
    """JAX/Pallas re-implementation of BaseNet's forward semantics."""

    def __init__(self, backbone="resnet50", in_ch=3, num_classes=8,
                 key=jax.random.PRNGKey(0)):
        assert backbone in ("resnet50", "resnet101")
        # TODO(synk): the pretrained torchvision ResNet-50/101 trunk cannot be reproduced
        # here (no checkpoint load) and `self.head` is undefined in the base class; a
        # deterministic 2-layer strided-conv stem (128 lane-dense channels) stands in for
        # `backbone.base_forward(x)[-1]` and a 1x1 conv stands in for `self.head`.
        k1, k2, k3 = jax.random.split(key, 3)
        c1 = c2 = 128
        kin = 9 * in_ch
        kin_pad = _round_up(kin, 16)                      # 27 -> 32 (sublane-friendly K)
        w1 = 0.05 * jax.random.normal(k1, (kin, c1), jnp.float32)
        self.w1 = jnp.pad(w1, ((0, kin_pad - kin), (0, 0))).astype(jnp.bfloat16)
        self.b1 = jnp.zeros((c1,), jnp.float32)
        self.w2 = (0.05 * jax.random.normal(k2, (9 * c1, c2), jnp.float32)
                   ).astype(jnp.bfloat16)
        self.b2 = jnp.zeros((c2,), jnp.float32)
        # head stored pre-transposed (num_classes, c2): 128 channels on lanes
        self.wh = (0.05 * jax.random.normal(k3, (num_classes, c2), jnp.float32)
                   ).astype(jnp.bfloat16)
        self.bh = jnp.zeros((num_classes,), jnp.float32)
        self.num_classes = num_classes

    # ---- backbone + fused head (+optional fused softmax) + upsample --------- #
    def base_forward(self, x_nchw, softmax_head=False):
        h, w = x_nchw.shape[-2:]
        x = jnp.transpose(x_nchw, (0, 2, 3, 1))                     # NCHW -> NHWC (glue)
        x = conv3x3_nhwc(x, self.w1, self.b1, stride=2, pad=1, relu=True)   # bf16 feats
        logits = conv3x3_nhwc(x, self.w2, self.b2, stride=2, pad=1, relu=True,
                              head_w=self.wh, head_b=self.bh,
                              softmax_head=softmax_head)            # NCHW f32
        return bilinear_resize_nchw(logits, h, w)                   # NCHW f32

    # ---- forward (with optional TTA) ---------------------------------------- #
    def forward(self, x_nchw, tta=False):
        if not tta:
            return self.base_forward(x_nchw)

        n = x_nchw.shape[0]
        h, w = x_nchw.shape[-2:]
        x32 = x_nchw.astype(jnp.float32)
        scales = [0.5, 0.75, 1.0, 1.5, 2.0]
        final_result = None
        for scale in scales:
            ch, cw = int(h * scale), int(w * scale)
            cur = bilinear_resize_nchw(x32, ch, cw)                 # (N, C, ch, cw)
            # fold the horizontal flip into the batch: one base_forward per scale,
            # class softmax fused into the conv2 epilogue.
            both = jnp.concatenate([cur, jnp.flip(cur, axis=3)], axis=0)
            probs = self.base_forward(both, softmax_head=True)      # (2N, nc, ch, cw)
            # un-flip, sum before the (linear) upsample: resize(a)+resize(b)==resize(a+b)
            merged = probs[:n] + jnp.flip(probs[n:], axis=3)
            up = bilinear_resize_nchw(merged, h, w)
            final_result = up if final_result is None else final_result + up
        return final_result


# ----------------------------------------------------------------------------- #
# main
# ----------------------------------------------------------------------------- #
if __name__ == "__main__":
    key = jax.random.PRNGKey(0)
    x = jax.random.normal(key, (2, 3, 16, 16), jnp.float32)   # NCHW, like PyTorch

    model = BaseNetPallas("resnet50", in_ch=3, num_classes=8,
                          key=jax.random.PRNGKey(0))

    fwd = jax.jit(lambda inp: model.forward(inp, tta=False))
    out = jax.block_until_ready(fwd(x))
    assert out.shape == (2, 8, 16, 16), out.shape
    assert bool(jnp.all(jnp.isfinite(out)))

    # exercise the TTA-critical path once: fused class-softmax epilogue + resize of probs
    probs_fn = jax.jit(lambda inp: model.base_forward(inp, softmax_head=True))
    probs = jax.block_until_ready(probs_fn(x))
    assert probs.shape == (2, 8, 16, 16)
    assert bool(jnp.all(jnp.isfinite(probs)))
    # per-pixel class probabilities stay normalized through the linear resize
    sums = jnp.sum(probs, axis=1)
    assert bool(jnp.all(jnp.abs(sums - 1.0) < 1e-2)), float(jnp.max(jnp.abs(sums - 1.0)))

    print("KERNEL_OK")
</pallas_src>

<mosaic_0001>
module attributes {stable_mosaic.version = 11 : i64} {
  func.func @_mm_kernel(%arg0: i32, %arg1: i32, %arg2: i32, %arg3: memref<64x32xbf16, #tpu.memory_space<vmem>>, %arg4: memref<32x128xbf16, #tpu.memory_space<vmem>>, %arg5: memref<1x128xf32, #tpu.memory_space<vmem>>, %arg6: memref<64x128xbf16, #tpu.memory_space<vmem>>, %arg7: memref<64x128xf32, #tpu.memory_space<vmem>>) attributes {dimension_semantics = [#tpu.dimension_semantics<parallel>, #tpu.dimension_semantics<parallel>, #tpu.dimension_semantics<arbitrary>], iteration_bounds = array<i64: 2, 1, 1>, scalar_prefetch = 0 : i64, scratch_operands = 1 : i64, tpu.core_type = #tpu.core_type<tc>, window_params = [{transform_indices = @transform_0, window_bounds = array<i64: 64, 32>}, {transform_indices = @transform_1, window_bounds = array<i64: 32, 128>}, {transform_indices = @transform_2, window_bounds = array<i64: 1, 128>}, {transform_indices = @transform_3, window_bounds = array<i64: 64, 128>}]} {
    %c0_i32 = arith.constant 0 : i32
    %0 = arith.cmpi eq, %arg2, %c0_i32 : i32
    %1 = arith.extui %0 : i1 to i32
    %c0_i32_0 = arith.constant 0 : i32
    %2 = arith.cmpi ne, %1, %c0_i32_0 : i32
    scf.if %2 {
      %cst_10 = arith.constant 0.000000e+00 : f32
      %12 = vector.broadcast %cst_10 : f32 to vector<64x128xf32>
      %c0_11 = arith.constant 0 : index
      %c0_12 = arith.constant 0 : index
      %13 = vector.load %arg7[%c0_11, %c0_12] : memref<64x128xf32, #tpu.memory_space<vmem>>, vector<64x128xf32>
      tpu.vector_store %arg7[%c0_11, %c0_12], %12 {strides = array<i32>} : memref<64x128xf32, #tpu.memory_space<vmem>>, vector<64x128xf32>,
    } else {
    }
    %c0 = arith.constant 0 : index
    %c0_1 = arith.constant 0 : index
    %3 = vector.load %arg7[%c0, %c0_1] : memref<64x128xf32, #tpu.memory_space<vmem>>, vector<64x128xf32>
    %c0_2 = arith.constant 0 : index
    %c0_3 = arith.constant 0 : index
    %4 = vector.load %arg3[%c0_2, %c0_3] : memref<64x32xbf16, #tpu.memory_space<vmem>>, vector<64x32xbf16>
    %c0_4 = arith.constant 0 : index
    %c0_5 = arith.constant 0 : index
    %5 = vector.load %arg4[%c0_4, %c0_5] : memref<32x128xbf16, #tpu.memory_space<vmem>>, vector<32x128xbf16>
    %cst = arith.constant dense<0.000000e+00> : vector<64x128xf32>
    %6 = tpu.matmul %4, %5, %cst {dimension_numbers = #tpu.dot_dimension_numbers<[1], [0], [0], [1], [0, 0, 1, 1], [], []>} : vector<64x32xbf16>, vector<32x128xbf16>, vector<64x128xf32> -> vector<64x128xf32>
    %7 = arith.addf %3, %6 : vector<64x128xf32>
    %c0_6 = arith.constant 0 : index
    %c0_7 = arith.constant 0 : index
    %8 = vector.load %arg7[%c0_6, %c0_7] : memref<64x128xf32, #tpu.memory_space<vmem>>, vector<64x128xf32>
    tpu.vector_store %arg7[%c0_6, %c0_7], %7 {strides = array<i32>} : memref<64x128xf32, #tpu.memory_space<vmem>>, vector<64x128xf32>,
    %c0_i32_8 = arith.constant 0 : i32
    %9 = arith.cmpi eq, %arg2, %c0_i32_8 : i32
    %10 = arith.extui %9 : i1 to i32
    %c0_i32_9 = arith.constant 0 : i32
    %11 = arith.cmpi ne, %10, %c0_i32_9 : i32
    scf.if %11 {
      %c0_10 = arith.constant 0 : index
      %c0_11 = arith.constant 0 : index
      %12 = vector.load %arg7[%c0_10, %c0_11] : memref<64x128xf32, #tpu.memory_space<vmem>>, vector<64x128xf32>
      %c0_12 = arith.constant 0 : index
      %c0_13 = arith.constant 0 : index
      %13 = vector.load %arg5[%c0_12, %c0_13] : memref<1x128xf32, #tpu.memory_space<vmem>>, vector<1x128xf32>
      %14 = vector.broadcast %13 : vector<1x128xf32> to vector<64x128xf32>
      %15 = arith.addf %12, %14 : vector<64x128xf32>
      %cst_14 = arith.constant 0.000000e+00 : f32
      %16 = vector.broadcast %cst_14 : f32 to vector<64x128xf32>
      %17 = arith.maximumf %15, %16 : vector<64x128xf32>
      %18 = arith.truncf %17 : vector<64x128xf32> to vector<64x128xbf16>
      %c0_15 = arith.constant 0 : index
      %c0_16 = arith.constant 0 : index
      %19 = vector.load %arg6[%c0_15, %c0_16] : memref<64x128xbf16, #tpu.memory_space<vmem>>, vector<64x128xbf16>
      tpu.vector_store %arg6[%c0_15, %c0_16], %18 {strides = array<i32>} : memref<64x128xbf16, #tpu.memory_space<vmem>>, vector<64x128xbf16>,
    } else {
    }
    return
  }
  func.func @transform_0(%arg0: i32, %arg1: i32, %arg2: i32) -> (i32, i32) {
    %c0_i32 = arith.constant 0 : i32
    return %arg0, %arg2 : i32, i32
  }
  func.func @transform_1(%arg0: i32, %arg1: i32, %arg2: i32) -> (i32, i32) {
    %c0_i32 = arith.constant 0 : i32
    return %arg2, %arg1 : i32, i32
  }
  func.func @transform_2(%arg0: i32, %arg1: i32, %arg2: i32) -> (i32, i32) {
    %c0_i32 = arith.constant 0 : i32
    %c0_i32_0 = arith.constant 0 : i32
    return %c0_i32, %arg1 : i32, i32
  }
  func.func @transform_3(%arg0: i32, %arg1: i32, %arg2: i32) -> (i32, i32) {
    %c0_i32 = arith.constant 0 : i32
    return %arg0, %arg1 : i32, i32
  }
}

module attributes {stable_mosaic.version = 11 : i64} {
  func.func @_mm_kernel(%arg0: i32, %arg1: i32, %arg2: i32, %arg3: memref<128x384xbf16, #tpu.memory_space<vmem>>, %arg4: memref<384x128xbf16, #tpu.memory_space<vmem>>, %arg5: memref<1x128xf32, #tpu.memory_space<vmem>>, %arg6: memref<8x128xbf16, #tpu.memory_space<vmem>>, %arg7: memref<8x1xf32, #tpu.memory_space<vmem>>, %arg8: memref<8x128xf32, #tpu.memory_space<vmem>>, %arg9: memref<128x128xf32, #tpu.memory_space<vmem>>) attributes {dimension_semantics = [#tpu.dimension_semantics<parallel>, #tpu.dimension_semantics<parallel>, #tpu.dimension_semantics<arbitrary>], iteration_bounds = array<i64: 1, 1, 3>, scalar_prefetch = 0 : i64, scratch_operands = 1 : i64, tpu.core_type = #tpu.core_type<tc>, window_params = [{transform_indices = @transform_0, window_bounds = array<i64: 128, 384>}, {transform_indices = @transform_1, window_bounds = array<i64: 384, 128>}, {transform_indices = @transform_2, window_bounds = array<i64: 1, 128>}, {pipeline_mode = #tpu.pipeline_mode<synchronous>, transform_indices = @transform_3, window_bounds = array<i64: 8, 128>}, {pipeline_mode = #tpu.pipeline_mode<synchronous>, transform_indices = @transform_4, window_bounds = array<i64: 8, 1>}, {transform_indices = @transform_5, window_bounds = array<i64: 8, 128>}]} {
    %c0_i32 = arith.constant 0 : i32
    %0 = arith.cmpi eq, %arg2, %c0_i32 : i32
    %1 = arith.extui %0 : i1 to i32
    %c0_i32_0 = arith.constant 0 : i32
    %2 = arith.cmpi ne, %1, %c0_i32_0 : i32
    scf.if %2 {
      %cst_9 = arith.constant 0.000000e+00 : f32
      %12 = vector.broadcast %cst_9 : f32 to vector<128x128xf32>
      %c0_10 = arith.constant 0 : index
      %c0_11 = arith.constant 0 : index
      %13 = vector.load %arg9[%c0_10, %c0_11] : memref<128x128xf32, #tpu.memory_space<vmem>>, vector<128x128xf32>
      tpu.vector_store %arg9[%c0_10, %c0_11], %12 {strides = array<i32>} : memref<128x128xf32, #tpu.memory_space<vmem>>, vector<128x128xf32>,
    } else {
    }
    %c0 = arith.constant 0 : index
    %c0_1 = arith.constant 0 : index
    %3 = vector.load %arg9[%c0, %c0_1] : memref<128x128xf32, #tpu.memory_space<vmem>>, vector<128x128xf32>
    %c0_2 = arith.constant 0 : index
    %c0_3 = arith.constant 0 : index
    %4 = vector.load %arg3[%c0_2, %c0_3] : memref<128x384xbf16, #tpu.memory_space<vmem>>, vector<128x384xbf16>
    %c0_4 = arith.constant 0 : index
    %c0_5 = arith.constant 0 : index
    %5 = vector.load %arg4[%c0_4, %c0_5] : memref<384x128xbf16, #tpu.memory_space<vmem>>, vector<384x128xbf16>
    %cst = arith.constant dense<0.000000e+00> : vector<128x128xf32>
    %6 = tpu.matmul %4, %5, %cst {dimension_numbers = #tpu.dot_dimension_numbers<[1], [0], [0], [1], [0, 0, 1, 1], [], []>} : vector<128x384xbf16>, vector<384x128xbf16>, vector<128x128xf32> -> vector<128x128xf32>
    %7 = arith.addf %3, %6 : vector<128x128xf32>
    %c0_6 = arith.constant 0 : index
    %c0_7 = arith.constant 0 : index
    %8 = vector.load %arg9[%c0_6, %c0_7] : memref<128x128xf32, #tpu.memory_space<vmem>>, vector<128x128xf32>
    tpu.vector_store %arg9[%c0_6, %c0_7], %7 {strides = array<i32>} : memref<128x128xf32, #tpu.memory_space<vmem>>, vector<128x128xf32>,
    %c2_i32 = arith.constant 2 : i32
    %9 = arith.cmpi eq, %arg2, %c2_i32 : i32
    %10 = arith.extui %9 : i1 to i32
    %c0_i32_8 = arith.constant 0 : i32
    %11 = arith.cmpi ne, %10, %c0_i32_8 : i32
    scf.if %11 {
      %c0_9 = arith.constant 0 : index
      %c0_10 = arith.constant 0 : index
      %12 = vector.load %arg9[%c0_9, %c0_10] : memref<128x128xf32, #tpu.memory_space<vmem>>, vector<128x128xf32>
      %c0_11 = arith.constant 0 : index
      %c0_12 = arith.constant 0 : index
      %13 = vector.load %arg5[%c0_11, %c0_12] : memref<1x128xf32, #tpu.memory_space<vmem>>, vector<1x128xf32>
      %14 = vector.broadcast %13 : vector<1x128xf32> to vector<128x128xf32>
      %15 = arith.addf %12, %14 : vector<128x128xf32>
      %cst_13 = arith.constant 0.000000e+00 : f32
      %16 = vector.broadcast %cst_13 : f32 to vector<128x128xf32>
      %17 = arith.maximumf %15, %16 : vector<128x128xf32>
      %c0_14 = arith.constant 0 : index
      %c0_15 = arith.constant 0 : index
      %18 = vector.load %arg6[%c0_14, %c0_15] : memref<8x128xbf16, #tpu.memory_space<vmem>>, vector<8x128xbf16>
      %19 = arith.truncf %17 : vector<128x128xf32> to vector<128x128xbf16>
      %cst_16 = arith.constant dense<0.000000e+00> : vector<8x128xf32>
      %20 = tpu.matmul %18, %19, %cst_16 {dimension_numbers = #tpu.dot_dimension_numbers<[1], [1], [0], [0], [0, 0, 1, 0], [], []>} : vector<8x128xbf16>, vector<128x128xbf16>, vector<8x128xf32> -> vector<8x128xf32>
      %c0_17 = arith.constant 0 : index
      %c0_18 = arith.constant 0 : index
      %21 = vector.load %arg7[%c0_17, %c0_18] : memref<8x1xf32, #tpu.memory_space<vmem>>, vector<8x1xf32>
      %22 = vector.broadcast %21 : vector<8x1xf32> to vector<8x128xf32>
      %23 = arith.addf %20, %22 : vector<8x128xf32>
      %c0_19 = arith.constant 0 : index
      %c0_20 = arith.constant 0 : index
      %24 = vector.load %arg8[%c0_19, %c0_20] : memref<8x128xf32, #tpu.memory_space<vmem>>, vector<8x128xf32>
      tpu.vector_store %arg8[%c0_19, %c0_20], %23 {strides = array<i32>} : memref<8x128xf32, #tpu.memory_space<vmem>>, vector<8x128xf32>,
    } else {
    }
    return
  }
  func.func @transform_0(%arg0: i32, %arg1: i32, %arg2: i32) -> (i32, i32) {
    %c0_i32 = arith.constant 0 : i32
    return %arg0, %arg2 : i32, i32
  }
  func.func @transform_1(%arg0: i32, %arg1: i32, %arg2: i32) -> (i32, i32) {
    %c0_i32 = arith.constant 0 : i32
    return %arg2, %arg1 : i32, i32
  }
  func.func @transform_2(%arg0: i32, %arg1: i32, %arg2: i32) -> (i32, i32) {
    %c0_i32 = arith.constant 0 : i32
    %c0_i32_0 = arith.constant 0 : i32
    return %c0_i32, %arg1 : i32, i32
  }
  func.func @transform_3(%arg0: i32, %arg1: i32, %arg2: i32) -> (i32, i32) {
    %c0_i32 = arith.constant 0 : i32
    %c0_i32_0 = arith.constant 0 : i32
    %c0_i32_1 = arith.constant 0 : i32
    return %c0_i32, %c0_i32_0 : i32, i32
  }
  func.func @transform_4(%arg0: i32, %arg1: i32, %arg2: i32) -> (i32, i32) {
    %c0_i32 = arith.constant 0 : i32
    %c0_i32_0 = arith.constant 0 : i32
    %c0_i32_1 = arith.constant 0 : i32
    return %c0_i32, %c0_i32_0 : i32, i32
  }
  func.func @transform_5(%arg0: i32, %arg1: i32, %arg2: i32) -> (i32, i32) {
    %c0_i32 = arith.constant 0 : i32
    %c0_i32_0 = arith.constant 0 : i32
    return %c0_i32, %arg0 : i32, i32
  }
}

module attributes {stable_mosaic.version = 11 : i64} {
  func.func @_resize_kernel(%arg0: i32, %arg1: i32, %arg2: i32, %arg3: memref<1x4x4xf32, #tpu.memory_space<vmem>>, %arg4: memref<16x4xf32, #tpu.memory_space<vmem>>, %arg5: memref<4x16xf32, #tpu.memory_space<vmem>>, %arg6: memref<1x16x16xf32, #tpu.memory_space<vmem>>) attributes {dimension_semantics = [#tpu.dimension_semantics<parallel>, #tpu.dimension_semantics<parallel>, #tpu.dimension_semantics<parallel>], iteration_bounds = array<i64: 16, 1, 1>, scalar_prefetch = 0 : i64, scratch_operands = 0 : i64, tpu.core_type = #tpu.core_type<tc>, window_params = [{transform_indices = @transform_0, window_bounds = array<i64: 1, 4, 4>}, {transform_indices = @transform_1, window_bounds = array<i64: 16, 4>}, {transform_indices = @transform_2, window_bounds = array<i64: 4, 16>}, {transform_indices = @transform_3, window_bounds = array<i64: 1, 16, 16>}]} {
    %c0 = arith.constant 0 : index
    %c0_0 = arith.constant 0 : index
    %c0_1 = arith.constant 0 : index
    %0 = vector.load %arg3[%c0, %c0_0, %c0_1] : memref<1x4x4xf32, #tpu.memory_space<vmem>>, vector<1x4x4xf32>
    %1 = vector.shape_cast %0 : vector<1x4x4xf32> to vector<4x4xf32>
    %c0_2 = arith.constant 0 : index
    %c0_3 = arith.constant 0 : index
    %2 = vector.load %arg4[%c0_2, %c0_3] : memref<16x4xf32, #tpu.memory_space<vmem>>, vector<16x4xf32>
    %cst = arith.constant dense<0.000000e+00> : vector<16x4xf32>
    %3 = tpu.matmul %2, %1, %cst {dimension_numbers = #tpu.dot_dimension_numbers<[1], [0], [0], [1], [0, 0, 1, 1], [], []>} : vector<16x4xf32>, vector<4x4xf32>, vector<16x4xf32> -> vector<16x4xf32>
    %c0_4 = arith.constant 0 : index
    %c0_5 = arith.constant 0 : index
    %4 = vector.load %arg5[%c0_4, %c0_5] : memref<4x16xf32, #tpu.memory_space<vmem>>, vector<4x16xf32>
    %cst_6 = arith.constant dense<0.000000e+00> : vector<16x16xf32>
    %5 = tpu.matmul %3, %4, %cst_6 {dimension_numbers = #tpu.dot_dimension_numbers<[1], [0], [0], [1], [0, 0, 1, 1], [], []>} : vector<16x4xf32>, vector<4x16xf32>, vector<16x16xf32> -> vector<16x16xf32>
    %c0_7 = arith.constant 0 : index
    %c0_8 = arith.constant 0 : index
    %c0_9 = arith.constant 0 : index
    %6 = vector.load %arg6[%c0_7, %c0_8, %c0_9] : memref<1x16x16xf32, #tpu.memory_space<vmem>>, vector<1x16x16xf32>
    %7 = vector.shape_cast %6 : vector<1x16x16xf32> to vector<16x16xf32>
    %8 = vector.shape_cast %5 : vector<16x16xf32> to vector<1x16x16xf32>
    tpu.vector_store %arg6[%c0_7, %c0_8, %c0_9], %8 {strides = array<i32>} : memref<1x16x16xf32, #tpu.memory_space<vmem>>, vector<1x16x16xf32>,
    return
  }
  func.func @transform_0(%arg0: i32, %arg1: i32, %arg2: i32) -> (i32, i32, i32) {
    %c0_i32 = arith.constant 0 : i32
    %c0_i32_0 = arith.constant 0 : i32
    %c0_i32_1 = arith.constant 0 : i32
    return %arg0, %c0_i32, %c0_i32_0 : i32, i32, i32
  }
  func.func @transform_1(%arg0: i32, %arg1: i32, %arg2: i32) -> (i32, i32) {
    %c0_i32 = arith.constant 0 : i32
    %c0_i32_0 = arith.constant 0 : i32
    return %arg1, %c0_i32 : i32, i32
  }
  func.func @transform_2(%arg0: i32, %arg1: i32, %arg2: i32) -> (i32, i32) {
    %c0_i32 = arith.constant 0 : i32
    %c0_i32_0 = arith.constant 0 : i32
    return %c0_i32, %arg2 : i32, i32
  }
  func.func @transform_3(%arg0: i32, %arg1: i32, %arg2: i32) -> (i32, i32, i32) {
    %c0_i32 = arith.constant 0 : i32
    return %arg0, %arg1, %arg2 : i32, i32, i32
  }
}

</mosaic_0001>

<bundles_post_ra>
// kernel: _lambda_.3
= control target key start
LH: loop header
LB: loop body
LE: loop exit
PB: predicated region body
PF: predicated region fallthrough
CT: control target
= control target key end

     0   :  { %s762_s12 = smov 0   ;;  %s764_s13 = smov 0   ;;  %s811_s0 = inlined_call_operand.vmem [shape: bf16[128,32], index: 0, kind: input, shape index: {}]   ;;  %s812_s1 = inlined_call_operand.vmem [shape: bf16[32,128], index: 1, kind: input, shape index: {}]   ;;  %s813_s2 = inlined_call_operand.vmem [shape: f32[1,128], index: 2, kind: input, shape index: {}]   ;;  %s814_s3 = inlined_call_operand.vmem [shape: bf16[128,128], index: 3, kind: output, shape index: {}]  }
   0x1   :  { %s766_s14 = smov 0  }
   0x2 LB: > { %s32_s15 = sadd.s32 1, %s736_s13  ;;  %p609_p0 = scmp.ge.s32.totalorder %s740_s14, 1  ;;  %s740_s14 = sphi %s766_s14, %s13_s14   ;;  %s736_s13 = sphi %s764_s13, %s816_s13   ;;  %s732_s12 = sphi %s762_s12, %s815_s12  }
   0x3   : > { %p34_p1 = scmp.ge.s32.totalorder %s32_s15, 2  ;;  %p188_p2 = scmp.lt.s32.totalorder %s740_s14, 3 }
   0x5   : > { %s818_s15 = smov (%p34_p1, %s32_s15), 0  ;;  %p189_p3 = pnand %p609_p0, %p188_p2 }
   0x6   : > { %s610_s18 = sshll.u32 (!%p189_p3), %s732_s12, 3 }
   0x7   : > { %192 = sbr.rel (%p189_p3) target bundleno = 227 (0xe3), region = 32  ;;  %p230_p4 = scmp.lt.s32.totalorder (!%p189_p3), %s610_s18, 15 }
   0xc   : > { %v712_v0 = vld [vmem:[%s812_s1 + $0x8] sm:$0xff]   ;;  %v713_v1 = vld [vmem:[%s812_s1] sm:$0xff]   ;;  %s820_s18 = smov (!%p230_p4, %s610_s18), 15  ;;  %vm324_vm0 = vcmask 261120  }
   0xd   : > { %672 = vmatprep.subr.bf16.mxu0 %v712_v0  ;;  %684 = vmatprep.subr.bf16.mxu1 %v712_v0  ;;  %s611_s21 = sshll.u32 %s820_s18, 2  ;;  %v624_v7 = vld [vmem:[%s813_s2] ss:$0 sm:$0xff] }
   0xe   : > { %673 = vmatpush3.bf16.msra.mxu0 %v712_v0  ;;  %686 = vmatpush3.bf16.msra.mxu1 %v712_v0  ;;  %s236_s24 = scalar_lea.vmem %s811_s0, %s611_s21  ;;  %s257_s29 = scalar_lea.vmem %s814_s3, %s611_s21 }
   0xf   : > { %674 = vmatprep.subr.bf16.mxu0 %v713_v1  ;;  %685 = vmatprep.subr.bf16.mxu1 %v713_v1  ;;  %v714_v2 = vld [vmem:[%s236_s24] sm:$0xff]   ;;  %v715_v3 = vld [vmem:[%s236_s24 + $0x10] sm:$0xff]   ;;  %v716_v4 = vld [vmem:[%s236_s24 + $0x8] sm:$0xff]  }
  0x10   : > { %676 = vmatprep.mubr.msk.bf16.mxu0 %vm324_vm0, %v714_v2  ;;  %680 = vmatprep.mubr.msk.bf16.mxu1 %vm324_vm0, %v715_v3  ;;  %v717_v5 = vld [vmem:[%s236_s24 + $0x18] sm:$0xff]  }
  0x12   : > { %675 = vmatpush3.bf16.msra.mxu0 %v713_v1  ;;  %687 = vmatpush3.bf16.msra.mxu1 %v713_v1 }
  0x15   : > { %677 = vmatmul.mubr.msk.bf16.vlgmr.msra.gmra.mxu0 %vm324_vm0, %v716_v4  ;;  %681 = vmatmul.mubr.msk.bf16.vlgmr.msra.gmra.mxu1 %vm324_vm0, %v717_v5 }
  0xd5   : > { %v678_v6 = vpop.f32.mrf.mxu0  ;;  %v682_v8 = vpop.f32.mrf.mxu1 }
  0xd6   : > { %v438_v10 = vadd.f32 %v678_v6, %v624_v7  ;;  %v442_v12 = vadd.f32 %v682_v8, %v624_v7 }
  0xd7   : > { %v371_v9 = vpop.f32.mrf.mxu0  ;;  %v387_v11 = vpop.f32.mrf.mxu1 }
  0xd8   : > { %v436_v14 = vadd.f32 %v624_v7, %v371_v9  ;;  %v440_v17 = vadd.f32 %v624_v7, %v387_v11  ;;  %v446_v20 = vmax.f32 %v438_v10, 0.0  ;;  %v450_v24 = vmax.f32 %v442_v12, 0.0 }
  0xd9   : > { %v679_v13 = vpop.f32.mrf.mxu0  ;;  %v683_v16 = vpop.f32.mrf.mxu1 }
  0xda   : > { %v439_v15 = vadd.f32 %v679_v13, %v624_v7  ;;  %v443_v18 = vadd.f32 %v683_v16, %v624_v7  ;;  %v444_v27 = vmax.f32 %v436_v14, 0.0  ;;  %v448_v30 = vmax.f32 %v440_v17, 0.0 }
  0xdb   : > { %v374_v19 = vpop.f32.mrf.mxu0  ;;  %v390_v23 = vpop.f32.mrf.mxu1 }
  0xdc   : > { %v447_v21 = vmax.f32 %v439_v15, 0.0  ;;  %v437_v22 = vadd.f32 %v624_v7, %v374_v19  ;;  %v451_v25 = vmax.f32 %v443_v18, 0.0  ;;  %v441_v26 = vadd.f32 %v624_v7, %v390_v23 }
  0xde   : > { %v651_v28 = vpack.c.bf16 %v447_v21, %v446_v20  ;;  %v445_v29 = vmax.f32 %v437_v22, 0.0  ;;  %v661_v31 = vpack.c.bf16 %v451_v25, %v450_v24  ;;  %v449_v32 = vmax.f32 %v441_v26, 0.0 }
  0xe0   : > { %663 = vst [vmem:[%s257_s29 + $0x8] sm:$0xff] %v651_v28   ;;  %v646_v33 = vpack.c.bf16 %v445_v29, %v444_v27  ;;  %665 = vst [vmem:[%s257_s29 + $0x18] sm:$0xff] %v661_v31   ;;  %v656_v34 = vpack.c.bf16 %v449_v32, %v448_v30 }
  0xe2   : > { %647 = vst [vmem:[%s257_s29] sm:$0xff] %v646_v33   ;;  %664 = vst [vmem:[%s257_s29 + $0x10] sm:$0xff] %v656_v34  }
  0xe3 PF: > { %s13_s14 = sadd.s32 1, %s740_s14   ;;  %s815_s12 = smov %s736_s13 }
  0xe4   : > { %p10_p5 = scmp.ge.s32.totalorder %s13_s14, 4   ;;  %s816_s13 = smov %s818_s15 }
  0xe6   :  { %12 = sbr.rel (!%p10_p5) target bundleno = 2 (0x2), region = 76 }

// kernel: _lambda_.5
= control target key start
LH: loop header
LB: loop body
LE: loop exit
PB: predicated region body
PF: predicated region fallthrough
CT: control target
= control target key end

     0   :  { %8 = vsyncpa [#allocation3], 0  ;;  %s852_s0 = inlined_call_operand.vmem [shape: f32[16,4,4], index: 0, kind: input, shape index: {}]   ;;  %s853_s1 = inlined_call_operand.vmem [shape: f32[16,4], index: 1, kind: input, shape index: {}]   ;;  %s854_s2 = inlined_call_operand.vmem [shape: f32[4,16], index: 2, kind: input, shape index: {}]   ;;  %s855_s3 = inlined_call_operand.hbm [shape: f32[16,16,16], index: 3, kind: output, shape index: {}]  }
   0x1   :  { %10 = vsyncpa [#allocation3 + $0x1], 0  ;;  %s725_s12 = smov 0   ;;  %s727_s13 = smov 0  }
   0x2   :  { %s729_s14 = smov 0   ;;  %s731_s15 = smov 0  }
   0x3   :  { %s733_s16 = smov 0   ;;  %s735_s17 = smov 0  }
   0x4 LB: > { %s530_s18 = sadd.s32 4294967295, %s700_s17   ;;  %s531_s19 = sadd.s32 4294967294, %s700_s17   ;;  %s700_s17 = sphi %s735_s17, %s16_s17   ;;  %s696_s16 = sphi %s733_s16, %s862_s16   ;;  %s692_s15 = sphi %s731_s15, %s861_s15   ;;  %s688_s14 = sphi %s729_s14, %s860_s14   ;;  %s684_s13 = sphi %s727_s13, %s859_s13   ;;  %s680_s12 = sphi %s725_s12, %s858_s12  }
   0x5   : > { %s35_s20 = sadd.s32 1, %s696_s16  ;;  %s124_s21 = sadd.s32 1, %s688_s14 }
   0x6   : > { %p37_p0 = scmp.ge.s32.totalorder %s35_s20, 16  ;;  %p134_p1 = scmp.ne.s32.totalorder %s688_s14, %s684_s13 }
   0x7   : > { %p135_p2 = scmp.eq.s32.totalorder %s530_s18, 15  ;;  %p140_p3 = scmp.ne.s32.totalorder %s684_s13, %s680_s12 }
   0x8   : > { %s864_s20 = smov (%p37_p0, %s35_s20), 0  ;;  %p141_p5 = scmp.eq.s32.totalorder %s531_s19, 15 }
   0x9   : > { %p765_p4 = por %p135_p2, %p134_p1  ;;  %s117_s23 = ssub.s32 %s696_s16, %s864_s20 }
   0xa   : > { %p536_p6 = scmp.ge.s32.totalorder %s700_s17, 1  ;;  %p122_p7 = scmp.eq.s32.totalorder %s117_s23, 0 }
   0xb   : > { %p772_p8 = por %p141_p5, %p140_p3  ;;  %p182_p9 = scmp.lt.s32.totalorder %s700_s17, 17 }
   0xc   : > { %s778_s25 = scalar_select %p122_p7, %s688_s14, %s124_s21  }
   0xd   : > { %p183_p10 = pnand %p536_p6, %p182_p9 }
   0xe   : > { %p214_p11 = scmp.lt.s32.totalorder (!%p183_p10), %s692_s15, 15  ;;  %s211_s10 = sand.u32 (!%p183_p10), 1, %s684_s13  }
   0xf   : > { %186 = sbr.rel (%p183_p10) target bundleno = 432 (0x1b0), region = 32  ;;  %s537_s11 = sshll.u32 (!%p183_p10), %s211_s10, 4 }
  0x10   : > { %s213_s18 = scalar_lea.vmem (!%p183_p10), [#allocation2], %s537_s11  ;;  %s550_s21 = sshll.u32 (!%p183_p10), %s692_s15, 8 }
  0x11   : > { %s423_s19 = sshll.u32 (!%p183_p10), %s213_s18, 4  ;;  %s805_s27 = scalar_lea.hbm (!%p183_p10), %s855_s3, %s550_s21  ;;  %s800_s19 = int_to_ptr.vmem [resolvable:$true] %s423_s19 }
  0x14   : > { %v230_v0 = vld [vmem:[%s853_s1] sm:$0xff]  ;;  %vm232_vm0 = vcmask 31744   ;;  %s215_s28 = scalar_select %p214_p11, %s692_s15, 15  ;;  %vm239_vm1 = vcmask 1043456   ;;  %v231_v2 = vld [vmem:[%s853_s1 + $0x8] sm:$0xff]  ;;  %vm403_vm2 = vcmask 130048  }
  0x15   : > { %559 = vmatprep.mubr.msk.f32.mxu0 %vm232_vm0, %v230_v0  ;;  %v318_v3 = vld [vmem:[%s854_s2] sm:$0xf]  ;;  %s702_s15 = smov [#allocation2]  }
  0x16   : > { %s538_s29 = sshll.u32 %s215_s28, 2  ;;  %562 = vmatprep.subr.msk.mxu1 %vm239_vm1, %v318_v3  ;;  %s807_s28 = scalar_lea.sflag [#allocation3], %s211_s10 }
  0x17   : > { %s217_s5 = scalar_lea.vmem %s852_s0, %s538_s29  ;;  %563 = vmatpush3.msk.msra.mxu1 %vm239_vm1, %v318_v3  ;;  %s624_s29 = scalar_lea.vmem %s800_s19, 256 }
  0x18   : > { %v229_v1 = vld [vmem:[%s217_s5] sm:$0xf]  ;;  %p625_p12 = scmp.ne.s32.totalorder %s800_s19, %s624_s29  ;;  %s628_s30 = sshll.u32 %s702_s15, 4  ;;  %s629_s30 = int_to_ptr.vmem [resolvable:$false] %s628_s30 }
  0x19   : > { %557 = vmatprep.subr.msk.mxu0 %vm239_vm1, %v229_v1  ;;  %s630_s4 = scalar_lea.vmem %s629_s30, 512  ;;  %p631_p1 = scmp.lt.s32.totalorder %s800_s19, %s629_s30 }
  0x1a   : > { %558 = vmatpush3.msk.msra.mxu0 %vm239_vm1, %v229_v1  ;;  %p626_p13 = pnand %p625_p12, %p765_p4  ;;  %p632_p2 = scmp.lt.s32.totalorder %s630_s4, %s624_s29 }
  0x1b   : > { %560 = vmatmul.mubr.msk.f32.vlgmr.msra.gmra.mxu0 %vm232_vm0, %v231_v2 }
  0x1c   : > { %p627_p0 = pneg %p626_p13  ;;  %p633_p3 = por %p632_p2, %p631_p1 }
  0x1e   : > { %p634_p5 = pnand %p633_p3, %p627_p0 }
  0xdb   : > { %v561_v4 = vpop.f32.mrf.mxu0 }
  0xdd   : > { %v309_v5 = vpop.f32.mrf.mxu0 }
  0xde   : > { %564 = vmatprep.mubr.msk.f32.mxu1 %vm232_vm0, %v309_v5 }
  0xdf   : > { %565 = vmatmul.mubr.msk.f32.vlgmr.msra.gmra.mxu1 %vm232_vm0, %v561_v4 }
 0x19f   : > { %v566_v6 = vpop.f32.mrf.mxu1 }
 0x1a0   : > { %405 = vst.msk [vmem:[%s213_s18 + $0x8] sm:$0xff] %vm403_vm2, %v566_v6 }
 0x1a1   : > { %v394_v7 = vpop.f32.mrf.mxu1 }
 0x1a2   : > { %404 = vst.msk [vmem:[%s213_s18] sm:$0xff] %vm403_vm2, %v394_v7 }
 0x1a3   : > { %637 = shalt.err (!%p634_p5)
}
 0x1a4   : > { %s638_s5 = scalar_lea.hbm %s805_s27, 256  ;;  %s642_s8 = scalar_lea.hbm %s855_s3, 4096 }
 0x1a5   : > { %p639_p6 = scmp.ne.s32.totalorder %s805_s27, %s638_s5  ;;  %p643_p10 = scmp.lt.s32.totalorder %s805_s27, %s855_s3 }
 0x1a6   : > { %p644_p11 = scmp.lt.s32.totalorder %s642_s8, %s638_s5 }
 0x1a7   : > { %p640_p7 = pnand %p639_p6, %p765_p4 }
 0x1a8   : > { %p645_p12 = por %p644_p11, %p643_p10 }
 0x1a9   : > { %p641_p9 = pneg %p640_p7 }
 0x1ab   : > { %p646_p13 = pnand %p645_p12, %p641_p9 }
 0x1ad   : > { %649 = shalt.err (!%p646_p13)
}
 0x1ae   : > { %s703_s11 = smov 128   ;;  %s704_s18 = smov 8  }
 0x1af   : > { %567 = dma.vmem_to_hbm [thread:$0]  (%p765_p4), %s800_s19, 256, %s805_s27, %s807_s28, %s703_s11, %s703_s11, %s704_s18  }
 0x1b0 PF: > { %p573_p0 = scmp.ge.s32.totalorder %s700_s17, 2  ;;  %s438_s21 = sand.u32 1, %s680_s12  }
 0x1b1   : > { %s439_s23 = scalar_lea.sflag [#allocation3], %s438_s21 }
 0x1b2   : > { %p570_p1 = pnand %p573_p0, %p772_p8 }
 0x1b4   : > { %p571_p2 = pneg %p570_p1 }
 0x1b6   : > { %675 = dma.done.wait (%p571_p2), %s439_s23, 256  }
 0x1b7   : > { %677 = vsyncadd (%p571_p2), %s439_s23, 4294967040  ;;  %s16_s17 = sadd.s32 1, %s700_s17   ;;  %s858_s12 = smov %s684_s13 }
 0x1b8   : > { %p13_p3 = scmp.ge.s32.totalorder %s16_s17, 18   ;;  %s859_s13 = smov %s688_s14 }
 0x1b9   : > { %s860_s14 = smov %s778_s25  ;;  %s861_s15 = smov %s696_s16 }
 0x1ba   : > { %s862_s16 = smov %s864_s20  ;;  %15 = sbr.rel (!%p13_p3) target bundleno = 4 (0x4), region = 73 }
 0x1bf   :  { %444 = vsyncpa [#allocation3], 1 }
 0x1c0   :  { %446 = vsyncpa [#allocation3 + $0x1], 1 }

// kernel: _lambda_.4
= control target key start
LH: loop header
LB: loop body
LE: loop exit
PB: predicated region body
PF: predicated region fallthrough
CT: control target
= control target key end

     0   :  { %s1632_s18 = smov 0   ;;  %s1634_s19 = smov 0   ;;  %s1858_s0 = inlined_call_operand.vmem [shape: bf16[128,1152], index: 0, kind: input, shape index: {}]   ;;  %s1859_s1 = inlined_call_operand.vmem [shape: bf16[1152,128], index: 1, kind: input, shape index: {}]   ;;  %s1860_s2 = inlined_call_operand.vmem [shape: f32[1,128], index: 2, kind: input, shape index: {}]   ;;  %s1861_s3 = inlined_call_operand.vmem [shape: bf16[8,128], index: 3, kind: input, shape index: {}]   ;;  %s1862_s4 = inlined_call_operand.vmem [shape: f32[8,1], index: 4, kind: input, shape index: {}]   ;;  %s1863_s5 = inlined_call_operand.vmem [shape: f32[8,128], index: 5, kind: output, shape index: {}]  }
   0x1   :  { %s1636_s20 = smov 0   ;;  %s1638_s21 = smov 0  }
   0x2   :  { %s1640_s22 = smov 0  }
   0x3 LB: > { %s27_s23 = sadd.s32 1, %s1592_s21  ;;  %p50_p1 = scmp.ne.s32.totalorder %s1584_s19, %s1580_s18  ;;  %s1596_s22 = sphi %s1640_s22, %s15_s22   ;;  %s1592_s21 = sphi %s1638_s21, %s1867_s21   ;;  %s1588_s20 = sphi %s1636_s20, %s1866_s20   ;;  %s1584_s19 = sphi %s1634_s19, %s1865_s19   ;;  %s1580_s18 = sphi %s1632_s18, %s1864_s18  }
   0x4   : > { %p28_p0 = scmp.ge.s32.totalorder %s27_s23, 3  ;;  %p51_p2 = scmp.eq.s32.totalorder %s1596_s22, 0 }
   0x5   : > { %s43_s25 = sadd.s32 1, %s1584_s19  ;;  %p1223_p5 = scmp.ge.s32.totalorder %s1596_s22, 3 }
   0x6   : > { %s1869_s23 = smov (%p28_p0, %s27_s23), 0  ;;  %p52_p3 = por %p51_p2, %p50_p1 }
   0x7   : > { %s39_s24 = ssub.s32 %s1592_s21, %s1869_s23  ;;  %210 = sbr.rel (%p1223_p5) target bundleno = 35 (0x23), region = 28 }
   0x8   : > { %p41_p4 = scmp.eq.s32.totalorder %s39_s24, 0 }
   0xa   : > { %s1667_s26 = scalar_select %p41_p4, %s1584_s19, %s43_s25  }
   0xc   : > { %213 = sbr.rel (!%p52_p3) target bundleno = 35 (0x23), region = 32  ;;  %s215_s27 = sand.u32 (%p52_p3), 1, %s1584_s19  }
   0xd   : > { %s1313_s28 = smul.u32 (%p52_p3), 12, %s1592_s21 }
   0xe   : > { %s1455_s29 = smul.u32 (%p52_p3), 192, %s215_s27 }
   0xf   : > { %s1675_s7 = scalar_lea.vmem (%p52_p3), %s1858_s0, %s1313_s28 }
  0x10   : > { %v238_v0 = vld [vmem:[%s1675_s7] sm:$0xff] (%p52_p3)  ;;  %v242_v2 = vld [vmem:[%s1675_s7 + $0x48] sm:$0xff] (%p52_p3)  ;;  %s1680_s8 = scalar_lea.vmem (%p52_p3), [#allocation3], %s1455_s29  ;;  %v246_v4 = vld [vmem:[%s1675_s7 + $0x90] sm:$0xff] (%p52_p3) }
  0x11   : > { %v240_v1 = vld [vmem:[%s1675_s7 + $0x24] sm:$0xff]  ;;  %239 = vst [vmem:[%s1680_s8] sm:$0xff] %v238_v0  ;;  %243 = vst [vmem:[%s1680_s8 + $0x18] sm:$0xff] %v242_v2  ;;  %v244_v3 = vld [vmem:[%s1675_s7 + $0x6c] sm:$0xff] }
  0x12   : > { %241 = vst [vmem:[%s1680_s8 + $0xc] sm:$0xff] %v240_v1  ;;  %v248_v5 = vld [vmem:[%s1675_s7 + $0xb4] sm:$0xff]  ;;  %245 = vst [vmem:[%s1680_s8 + $0x24] sm:$0xff] %v244_v3  ;;  %v252_v7 = vld [vmem:[%s1675_s7 + $0xfc] sm:$0xff] }
  0x13   : > { %247 = vst [vmem:[%s1680_s8 + $0x30] sm:$0xff] %v246_v4  ;;  %249 = vst [vmem:[%s1680_s8 + $0x3c] sm:$0xff] %v248_v5  ;;  %v250_v6 = vld [vmem:[%s1675_s7 + $0xd8] sm:$0xff]  ;;  %v254_v8 = vld [vmem:[%s1675_s7 + $0x120] sm:$0xff] }
  0x14   : > { %251 = vst [vmem:[%s1680_s8 + $0x48] sm:$0xff] %v250_v6  ;;  %253 = vst [vmem:[%s1680_s8 + $0x54] sm:$0xff] %v252_v7  ;;  %v256_v9 = vld [vmem:[%s1675_s7 + $0x144] sm:$0xff]  ;;  %v260_v11 = vld [vmem:[%s1675_s7 + $0x18c] sm:$0xff] }
  0x15   : > { %255 = vst [vmem:[%s1680_s8 + $0x60] sm:$0xff] %v254_v8  ;;  %v258_v10 = vld [vmem:[%s1675_s7 + $0x168] sm:$0xff]  ;;  %257 = vst [vmem:[%s1680_s8 + $0x6c] sm:$0xff] %v256_v9  ;;  %v262_v12 = vld [vmem:[%s1675_s7 + $0x1b0] sm:$0xff] }
  0x16   : > { %259 = vst [vmem:[%s1680_s8 + $0x78] sm:$0xff] %v258_v10  ;;  %261 = vst [vmem:[%s1680_s8 + $0x84] sm:$0xff] %v260_v11  ;;  %v264_v13 = vld [vmem:[%s1675_s7 + $0x1d4] sm:$0xff]  ;;  %v268_v15 = vld [vmem:[%s1675_s7 + $0x21c] sm:$0xff] }
  0x17   : > { %v266_v14 = vld [vmem:[%s1675_s7 + $0x1f8] sm:$0xff]  ;;  %263 = vst [vmem:[%s1680_s8 + $0x90] sm:$0xff] %v262_v12  ;;  %265 = vst [vmem:[%s1680_s8 + $0x9c] sm:$0xff] %v264_v13  ;;  %v1225_v16 = vld [vmem:[%s1675_s7 + $0x8] sm:$0xf] }
  0x18   : > { %267 = vst [vmem:[%s1680_s8 + $0xa8] sm:$0xff] %v266_v14  ;;  %v1227_v17 = vld [vmem:[%s1675_s7 + $0x2c] sm:$0xf]  ;;  %269 = vst [vmem:[%s1680_s8 + $0xb4] sm:$0xff] %v268_v15  ;;  %v1229_v18 = vld [vmem:[%s1675_s7 + $0x50] sm:$0xf] }
  0x19   : > { %1226 = vst [vmem:[%s1680_s8 + $0x8] sm:$0xf] %v1225_v16  ;;  %1228 = vst [vmem:[%s1680_s8 + $0x14] sm:$0xf] %v1227_v17  ;;  %v1231_v19 = vld [vmem:[%s1675_s7 + $0x74] sm:$0xf] }
  0x1a   : > { %v1233_v20 = vld [vmem:[%s1675_s7 + $0x98] sm:$0xf]  ;;  %1230 = vst [vmem:[%s1680_s8 + $0x20] sm:$0xf] %v1229_v18  ;;  %1232 = vst [vmem:[%s1680_s8 + $0x2c] sm:$0xf] %v1231_v19 }
  0x1b   : > { %1234 = vst [vmem:[%s1680_s8 + $0x38] sm:$0xf] %v1233_v20  ;;  %v1235_v21 = vld [vmem:[%s1675_s7 + $0xbc] sm:$0xf]  ;;  %v1237_v22 = vld [vmem:[%s1675_s7 + $0xe0] sm:$0xf] }
  0x1c   : > { %v1239_v23 = vld [vmem:[%s1675_s7 + $0x104] sm:$0xf]  ;;  %1236 = vst [vmem:[%s1680_s8 + $0x44] sm:$0xf] %v1235_v21  ;;  %1238 = vst [vmem:[%s1680_s8 + $0x50] sm:$0xf] %v1237_v22 }
  0x1d   : > { %1240 = vst [vmem:[%s1680_s8 + $0x5c] sm:$0xf] %v1239_v23  ;;  %v1241_v24 = vld [vmem:[%s1675_s7 + $0x128] sm:$0xf]  ;;  %v1243_v25 = vld [vmem:[%s1675_s7 + $0x14c] sm:$0xf] }
  0x1e   : > { %v1245_v26 = vld [vmem:[%s1675_s7 + $0x170] sm:$0xf]  ;;  %1242 = vst [vmem:[%s1680_s8 + $0x68] sm:$0xf] %v1241_v24  ;;  %1244 = vst [vmem:[%s1680_s8 + $0x74] sm:$0xf] %v1243_v25 }
  0x1f   : > { %1246 = vst [vmem:[%s1680_s8 + $0x80] sm:$0xf] %v1245_v26  ;;  %v1247_v27 = vld [vmem:[%s1675_s7 + $0x194] sm:$0xf]  ;;  %v1249_v28 = vld [vmem:[%s1675_s7 + $0x1b8] sm:$0xf] }
  0x20   : > { %v1251_v29 = vld [vmem:[%s1675_s7 + $0x1dc] sm:$0xf]  ;;  %1248 = vst [vmem:[%s1680_s8 + $0x8c] sm:$0xf] %v1247_v27  ;;  %1250 = vst [vmem:[%s1680_s8 + $0x98] sm:$0xf] %v1249_v28 }
  0x21   : > { %1252 = vst [vmem:[%s1680_s8 + $0xa4] sm:$0xf] %v1251_v29  ;;  %v1253_v30 = vld [vmem:[%s1675_s7 + $0x200] sm:$0xf]  ;;  %v1255_v31 = vld [vmem:[%s1675_s7 + $0x224] sm:$0xf] }
  0x22   : > { %1254 = vst [vmem:[%s1680_s8 + $0xb0] sm:$0xf] %v1253_v30  ;;  %1256 = vst [vmem:[%s1680_s8 + $0xbc] sm:$0xf] %v1255_v31 }
  0x23 PF: > { %p1257_p6 = scmp.ge.s32.totalorder %s1596_s22, 1  ;;  %p326_p7 = scmp.lt.s32.totalorder %s1596_s22, 4 }
  0x25   : > { %p327_p8 = pnand %p1257_p6, %p326_p7 }
  0x26   : > { %s333_s9 = sand.u32 (!%p327_p8), 1, %s1580_s18   ;;  %s372_s10 = smul.u32 (!%p327_p8), 48, %s1588_s20 }
  0x27   : > { %330 = sbr.rel (%p327_p8) target bundleno = 628 (0x274), region = 62  ;;  %p1259_p10 = scmp.ne.s32.totalorder (!%p327_p8), %s1588_s20, 0 }
  0x28   : > { %s1456_s11 = smul.u32 (!%p327_p8), 192, %s333_s9  ;;  %p373_p9 = scmp.lt.s32.totalorder (!%p327_p8), %s372_s10, 143 }
  0x2a   : > { %s1752_s16 = scalar_lea.vmem (!%p327_p8), [#allocation3], %s1456_s11 }
  0x2c   : > { %s1871_s10 = smov (!%p373_p9, %s372_s10), 143  ;;  %392 = sbr.rel (%p1259_p10) target bundleno = 58 (0x3a), region = 70 }
  0x2d   : > { %s1258_s12 = sshll.u32 %s1871_s10, 2 }
  0x2e   : > { %s1750_s15 = scalar_lea.vmem %s1859_s1, %s1258_s12 }
  0x31   : > { %v1598_v32 = vmov 0.0  }
  0x32   : > { %393 = vst [vmem:[#allocation2 + $0x30] sm:$0xff] %v1598_v32  ;;  %394 = vst [vmem:[#allocation2] sm:$0xff] %v1598_v32 }
  0x33   : > { %395 = vst [vmem:[#allocation2 + $0x58] sm:$0xff] %v1598_v32  ;;  %396 = vst [vmem:[#allocation2 + $0x18] sm:$0xff] %v1598_v32 }
  0x34   : > { %397 = vst [vmem:[#allocation2 + $0x50] sm:$0xff] %v1598_v32  ;;  %398 = vst [vmem:[#allocation2 + $0x68] sm:$0xff] %v1598_v32 }
  0x35   : > { %399 = vst [vmem:[#allocation2 + $0x8] sm:$0xff] %v1598_v32  ;;  %400 = vst [vmem:[#allocation2 + $0x48] sm:$0xff] %v1598_v32 }
  0x36   : > { %401 = vst [vmem:[#allocation2 + $0x40] sm:$0xff] %v1598_v32  ;;  %402 = vst [vmem:[#allocation2 + $0x20] sm:$0xff] %v1598_v32 }
  0x37   : > { %403 = vst [vmem:[#allocation2 + $0x10] sm:$0xff] %v1598_v32  ;;  %404 = vst [vmem:[#allocation2 + $0x38] sm:$0xff] %v1598_v32 }
  0x38   : > { %405 = vst [vmem:[#allocation2 + $0x60] sm:$0xff] %v1598_v32  ;;  %406 = vst [vmem:[#allocation2 + $0x70] sm:$0xff] %v1598_v32 }
  0x39   : > { %407 = vst [vmem:[#allocation2 + $0x78] sm:$0xff] %v1598_v32  ;;  %408 = vst [vmem:[#allocation2 + $0x28] sm:$0xff] %v1598_v32 }
  0x3a PF: > { %v1501_v33 = vld [vmem:[%s1750_s15 + $0x78] sm:$0xff]   ;;  %v1504_v36 = vld [vmem:[%s1750_s15 + $0x70] sm:$0xff]   ;;  %v1507_v39 = vld [vmem:[%s1750_s15 + $0x68] sm:$0xff]   ;;  %p1308_p11 = scmp.ne.s32.totalorder %s1588_s20, 2 }
  0x3b   : > { %v1502_v34 = vld [vmem:[%s1750_s15 + $0x38] sm:$0xff]   ;;  %1314 = vmatprep.subr.bf16.mxu0 %v1501_v33  ;;  %v1505_v37 = vld [vmem:[%s1750_s15 + $0x30] sm:$0xff]   ;;  %v1508_v40 = vld [vmem:[%s1750_s15 + $0x28] sm:$0xff]  }
  0x3c   : > { %v1503_v35 = vld [vmem:[%s1750_s15 + $0xb8] sm:$0xff]   ;;  %1315 = vmatpush3.bf16.msra.mxu0 %v1502_v34  ;;  %v1506_v38 = vld [vmem:[%s1750_s15 + $0xb0] sm:$0xff]   ;;  %v1509_v41 = vld [vmem:[%s1750_s15 + $0xa8] sm:$0xff]  }
  0x3d   : > { %1403 = vmatprep.subr.bf16.mxu1 %v1503_v35  ;;  %1316 = vmatprep.subr.bf16.mxu0 %v1504_v36  ;;  %v1510_v42 = vld [vmem:[%s1750_s15 + $0x60] sm:$0xff]   ;;  %v1513_v45 = vld [vmem:[%s1750_s15 + $0x58] sm:$0xff]   ;;  %v1516_v48 = vld [vmem:[%s1750_s15 + $0x50] sm:$0xff]  }
  0x3e   : > { %1404 = vmatpush3.bf16.msra.mxu1 %v1503_v35  ;;  %v1511_v43 = vld [vmem:[%s1750_s15 + $0x20] sm:$0xff]   ;;  %v1515_v46 = vld [vmem:[%s1750_s15 + $0x98] sm:$0xff]   ;;  %v1518_v49 = vld [vmem:[%s1750_s15 + $0x90] sm:$0xff]  }
  0x3f   : > { %1405 = vmatprep.subr.bf16.mxu1 %v1506_v38  ;;  %v1512_v44 = vld [vmem:[%s1750_s15 + $0xa0] sm:$0xff]   ;;  %v1514_v47 = vld [vmem:[%s1750_s15 + $0x18] sm:$0xff]   ;;  %v1517_v50 = vld [vmem:[%s1750_s15 + $0x10] sm:$0xff]  }
  0x40   : > { %1317 = vmatpush3.bf16.msra.mxu0 %v1505_v37  ;;  %v1519_v51 = vld [vmem:[%s1750_s15 + $0x48] sm:$0xff]   ;;  %v1522_v54 = vld [vmem:[%s1750_s15 + $0x40] sm:$0xff]   ;;  %v1537_v1 = vld [vmem:[%s1752_s16 + $0x50] ss:$12 sps:$4 sm:$0xff]  }
  0x41   : > { %1318 = vmatprep.subr.bf16.mxu0 %v1507_v39  ;;  %v1520_v52 = vld [vmem:[%s1750_s15 + $0x8] sm:$0xff]   ;;  %v1524_v55 = vld [vmem:[%s1750_s15 + $0x80] sm:$0xff]   ;;  %v1535_v3 = vld [vmem:[%s1752_s16 + $0x30] ss:$12 sps:$4 sm:$0xff]  }
  0x42   : > { %1406 = vmatpush3.bf16.msra.mxu1 %v1506_v38  ;;  %v1521_v53 = vld [vmem:[%s1750_s15 + $0x88] sm:$0xff]   ;;  %v1527_v56 = vld [vmem:[%s1752_s16 + $0x4] ss:$12 sps:$4 sm:$0xff]   ;;  %v1533_v0 = vld [vmem:[%s1752_s16 + $0x34] ss:$12 sps:$4 sm:$0xff]  }
  0x43   : > { %1407 = vmatprep.subr.bf16.mxu1 %v1509_v41  ;;  %v1528_v57 = vld [vmem:[%s1752_s16 + $0x8] ss:$12 sps:$4 sm:$0xff]   ;;  %v1523_v58 = vld [vmem:[%s1750_s15] sm:$0xff]   ;;  %809 = vmatprep.mubr.bf16.mxu0 %v1527_v56  ;;  %v1538_v4 = vld [vmem:[%s1752_s16 + $0x4c] ss:$12 sps:$4 sm:$0xff]  }
  0x44   : > { %1319 = vmatpush3.bf16.msra.mxu0 %v1508_v40  ;;  %1419 = vmatprep.mubr.bf16.mxu1 %v1528_v57  ;;  %v1525_v59 = vld [vmem:[%s1752_s16] ss:$12 sps:$4 sm:$0xff]   ;;  %v1530_v60 = vld [vmem:[%s1752_s16 + $0x1c] ss:$12 sps:$4 sm:$0xff]   ;;  %v1536_v62 = vld [vmem:[%s1752_s16 + $0x38] ss:$12 sps:$4 sm:$0xff]  }
  0x45   : > { %1320 = vmatprep.subr.bf16.mxu0 %v1510_v42  ;;  %v1529_v61 = vld [vmem:[%s1752_s16 + $0x20] ss:$12 sps:$4 sm:$0xff]   ;;  %v1532_v63 = vld [vmem:[%s1752_s16 + $0x18] ss:$12 sps:$4 sm:$0xff]   ;;  %v1544_v2 = vld [vmem:[%s1752_s16 + $0x68] ss:$12 sps:$4 sm:$0xff]  }
  0x46   : > { %1408 = vmatpush3.bf16.msra.mxu1 %v1509_v41  ;;  %v1545_v5 = vld [vmem:[%s1752_s16 + $0x80] ss:$12 sps:$4 sm:$0xff]   ;;  %v1552_v6 = vld [vmem:[%s1752_s16 + $0x98] ss:$12 sps:$4 sm:$0xff]   ;;  %v1540_v7 = vld [vmem:[%s1752_s16 + $0x48] ss:$12 sps:$4 sm:$0xff]  }
  0x47   : > { %1409 = vmatprep.subr.bf16.mxu1 %v1512_v44  ;;  %v1541_v8 = vld [vmem:[%s1752_s16 + $0x64] ss:$12 sps:$4 sm:$0xff]   ;;  %v1543_v10 = vld [vmem:[%s1752_s16 + $0x60] ss:$12 sps:$4 sm:$0xff]   ;;  %v1546_v11 = vld [vmem:[%s1752_s16 + $0x7c] ss:$12 sps:$4 sm:$0xff]  }
  0x48   : > { %1321 = vmatpush3.bf16.msra.mxu0 %v1511_v43  ;;  %v1553_v9 = vld [vmem:[%s1752_s16 + $0xb0] ss:$12 sps:$4 sm:$0xff]   ;;  %v1548_v12 = vld [vmem:[%s1752_s16 + $0x78] ss:$12 sps:$4 sm:$0xff]   ;;  %v1549_v13 = vld [vmem:[%s1752_s16 + $0x94] ss:$12 sps:$4 sm:$0xff]  }
  0x49   : > { %1322 = vmatprep.subr.bf16.mxu0 %v1513_v45  ;;  %v1551_v14 = vld [vmem:[%s1752_s16 + $0x90] ss:$12 sps:$4 sm:$0xff]   ;;  %v1554_v15 = vld [vmem:[%s1752_s16 + $0xac] ss:$12 sps:$4 sm:$0xff]   ;;  %v1556_v16 = vld [vmem:[%s1752_s16 + $0xa8] ss:$12 sps:$4 sm:$0xff]  }
  0x4a   : > { %1410 = vmatpush3.bf16.msra.mxu1 %v1512_v44  ;;  %v409_v22 = vld [vmem:[#allocation2 + $0x30] sm:$0xff]  ;;  %v410_v30 = vld [vmem:[#allocation2] sm:$0xff]  ;;  %v411_v37 = vld [vmem:[#allocation2 + $0x58] sm:$0xff] }
  0x4b   : > { %1411 = vmatprep.subr.bf16.mxu1 %v1515_v46  ;;  %v412_v44 = vld [vmem:[#allocation2 + $0x18] sm:$0xff] }
  0x4c   : > { %1323 = vmatpush3.bf16.msra.mxu0 %v1514_v47 }
  0x4d   : > { %1324 = vmatprep.subr.bf16.mxu0 %v1516_v48 }
  0x4e   : > { %1412 = vmatpush3.bf16.msra.mxu1 %v1515_v46 }
  0x4f   : > { %1413 = vmatprep.subr.bf16.mxu1 %v1518_v49 }
  0x50   : > { %1325 = vmatpush3.bf16.msra.mxu0 %v1517_v50 }
  0x51   : > { %1326 = vmatprep.subr.bf16.mxu0 %v1519_v51 }
  0x52   : > { %1414 = vmatpush3.bf16.msra.mxu1 %v1518_v49 }
  0x53   : > { %1415 = vmatprep.subr.bf16.mxu1 %v1521_v53 }
  0x54   : > { %1327 = vmatpush3.bf16.msra.mxu0 %v1520_v52  ;;  %v413_v52 = vld [vmem:[#allocation2 + $0x50] sm:$0xff] }
  0x55   : > { %1328 = vmatprep.subr.bf16.mxu0 %v1522_v54 }
  0x56   : > { %1416 = vmatpush3.bf16.msra.mxu1 %v1521_v53 }
  0x57   : > { %1417 = vmatprep.subr.bf16.mxu1 %v1524_v55 }
  0x58   : > { %1329 = vmatpush3.bf16.msra.mxu0 %v1523_v58 }
  0x5a   : > { %1418 = vmatpush3.bf16.msra.mxu1 %v1524_v55 }
  0x5b   : > { %810 = vmatmul.mubr.bf16.vlgmr.msra.gmra.mxu0 %v1525_v59  ;;  %v414_v59 = vld [vmem:[#allocation2 + $0x68] sm:$0xff] }
  0x5c   : > { %817 = vmatprep.mubr.bf16.mxu0 %v1530_v60 }
  0x5d   : > { %1420 = vmatmul.mubr.bf16.vlgmr.msra.gmra.mxu1 %v1529_v61 }
  0x5e   : > { %1423 = vmatprep.mubr.bf16.mxu1 %v1536_v62 }
  0x63   : > { %818 = vmatmul.mubr.bf16.gmra.mxu0 %v1532_v63 }
  0x64   : > { %825 = vmatprep.mubr.bf16.mxu0 %v1533_v0 }
  0x65   : > { %1424 = vmatmul.mubr.bf16.gmra.mxu1 %v1537_v1  ;;  %v415_v1 = vld [vmem:[#allocation2 + $0x8] sm:$0xff] }
  0x66   : > { %1427 = vmatprep.mubr.bf16.mxu1 %v1544_v2 }
  0x6b   : > { %826 = vmatmul.mubr.bf16.gmra.mxu0 %v1535_v3 }
  0x6c   : > { %833 = vmatprep.mubr.bf16.mxu0 %v1538_v4 }
  0x6d   : > { %1428 = vmatmul.mubr.bf16.gmra.mxu1 %v1545_v5 }
  0x6e   : > { %1431 = vmatprep.mubr.bf16.mxu1 %v1552_v6 }
  0x73   : > { %834 = vmatmul.mubr.bf16.gmra.mxu0 %v1540_v7 }
  0x74   : > { %841 = vmatprep.mubr.bf16.mxu0 %v1541_v8  ;;  %v416_v8 = vld [vmem:[#allocation2 + $0x48] sm:$0xff] }
  0x75   : > { %1432 = vmatmul.mubr.bf16.gmra.mxu1 %v1553_v9 }
  0x7b   : > { %842 = vmatmul.mubr.bf16.gmra.mxu0 %v1543_v10 }
  0x7c   : > { %849 = vmatprep.mubr.bf16.mxu0 %v1546_v11 }
  0x83   : > { %850 = vmatmul.mubr.bf16.gmra.mxu0 %v1548_v12 }
  0x84   : > { %857 = vmatprep.mubr.bf16.mxu0 %v1549_v13 }
  0x8b   : > { %858 = vmatmul.mubr.bf16.gmra.mxu0 %v1551_v14 }
  0x8c   : > { %865 = vmatprep.mubr.bf16.mxu0 %v1554_v15 }
  0x93   : > { %866 = vmatmul.mubr.bf16.gmra.mxu0 %v1556_v16  ;;  %v417_v16 = vld [vmem:[#allocation2 + $0x40] sm:$0xff] }
 0x11b   : > { %v1330_v17 = vpop.f32.mrf.mxu0 }
 0x11d   : > { %v1331_v18 = vpop.f32.mrf.mxu0  ;;  %v1421_v19 = vpop.f32.mrf.mxu1 }
 0x11e   : > { %v1332_v20 = vadd.f32 %v1331_v18, %v1330_v17 }
 0x11f   : > { %v1333_v21 = vpop.f32.mrf.mxu0  ;;  %v908_v23 = vpop.f32.mrf.mxu1 }
 0x120   : > { %v909_v24 = vadd.f32 %v1332_v20, %v908_v23  ;;  %v418_v23 = vld [vmem:[#allocation2 + $0x20] sm:$0xff] }
 0x121   : > { %v1334_v25 = vpop.f32.mrf.mxu0  ;;  %v1422_v26 = vpop.f32.mrf.mxu1 }
 0x122   : > { %v971_v27 = vadd.f32 %v909_v24, %v409_v22  ;;  %v1335_v28 = vadd.f32 %v1334_v25, %v1333_v21 }
 0x123   : > { %v1336_v29 = vpop.f32.mrf.mxu0  ;;  %v911_v31 = vpop.f32.mrf.mxu1 }
 0x124   : > { %987 = vst [vmem:[#allocation2 + $0x30] sm:$0xff] %v971_v27  ;;  %v912_v32 = vadd.f32 %v1335_v28, %v911_v31 }
 0x125   : > { %v1337_v33 = vpop.f32.mrf.mxu0  ;;  %v1425_v34 = vpop.f32.mrf.mxu1 }
 0x126   : > { %v972_v35 = vadd.f32 %v912_v32, %v410_v30  ;;  %v1338_v36 = vadd.f32 %v1337_v33, %v1336_v29  ;;  %v419_v29 = vld [vmem:[#allocation2 + $0x10] sm:$0xff] }
 0x127   : > { %v1339_v38 = vpop.f32.mrf.mxu0  ;;  %v924_v41 = vpop.f32.mrf.mxu1 }
 0x128   : > { %988 = vst [vmem:[#allocation2] sm:$0xff] %v972_v35  ;;  %v917_v39 = vadd.f32 %v1421_v19, %v1338_v36  ;;  %v420_v36 = vld [vmem:[#allocation2 + $0x38] sm:$0xff] }
 0x129   : > { %v1340_v40 = vpop.f32.mrf.mxu0  ;;  %v1426_v48 = vpop.f32.mrf.mxu1 }
 0x12a   : > { %v973_v42 = vadd.f32 %v917_v39, %v411_v37  ;;  %v1341_v43 = vadd.f32 %v1340_v40, %v1339_v38 }
 0x12b   : > { %v1342_v45 = vpop.f32.mrf.mxu0  ;;  %v927_v55 = vpop.f32.mrf.mxu1 }
 0x12c   : > { %989 = vst [vmem:[#allocation2 + $0x58] sm:$0xff] %v973_v42  ;;  %v920_v46 = vadd.f32 %v1422_v26, %v1341_v43 }
 0x12d   : > { %v1343_v47 = vpop.f32.mrf.mxu0  ;;  %v1429_v62 = vpop.f32.mrf.mxu1 }
 0x12e   : > { %v974_v49 = vadd.f32 %v920_v46, %v412_v44  ;;  %v1344_v50 = vadd.f32 %v1343_v47, %v1342_v45  ;;  %v421_v44 = vld [vmem:[#allocation2 + $0x60] sm:$0xff] }
 0x12f   : > { %v1345_v51 = vpop.f32.mrf.mxu0  ;;  %v940_v5 = vpop.f32.mrf.mxu1 }
 0x130   : > { %990 = vst [vmem:[#allocation2 + $0x18] sm:$0xff] %v974_v49  ;;  %v925_v53 = vadd.f32 %v1344_v50, %v924_v41 }
 0x131   : > { %v1346_v54 = vpop.f32.mrf.mxu0  ;;  %v1430_v12 = vpop.f32.mrf.mxu1 }
 0x132   : > { %v975_v56 = vadd.f32 %v925_v53, %v413_v52  ;;  %v1347_v57 = vadd.f32 %v1346_v54, %v1345_v51  ;;  %v422_v51 = vld [vmem:[#allocation2 + $0x70] sm:$0xff] }
 0x133   : > { %v1348_v58 = vpop.f32.mrf.mxu0  ;;  %v943_v19 = vpop.f32.mrf.mxu1 }
 0x134   : > { %991 = vst [vmem:[#allocation2 + $0x50] sm:$0xff] %v975_v56  ;;  %v928_v60 = vadd.f32 %v1347_v57, %v927_v55  ;;  %v423_v56 = vld [vmem:[#allocation2 + $0x78] sm:$0xff] }
 0x135   : > { %v1349_v61 = vpop.f32.mrf.mxu0  ;;  %v1433_v26 = vpop.f32.mrf.mxu1 }
 0x136   : > { %v976_v63 = vadd.f32 %v928_v60, %v414_v59  ;;  %v1350_v0 = vadd.f32 %v1349_v61, %v1348_v58 }
 0x137   : > { %v1351_v2 = vpop.f32.mrf.mxu0  ;;  %v956_v33 = vpop.f32.mrf.mxu1 }
 0x138   : > { %992 = vst [vmem:[#allocation2 + $0x68] sm:$0xff] %v976_v63  ;;  %v933_v3 = vadd.f32 %v1425_v34, %v1350_v0 }
 0x139   : > { %v1352_v4 = vpop.f32.mrf.mxu0  ;;  %v1434_v40 = vpop.f32.mrf.mxu1 }
 0x13a   : > { %v977_v6 = vadd.f32 %v933_v3, %v415_v1  ;;  %v1353_v7 = vadd.f32 %v1352_v4, %v1351_v2 }
 0x13b   : > { %v1354_v9 = vpop.f32.mrf.mxu0  ;;  %v959_v47 = vpop.f32.mrf.mxu1 }
 0x13c   : > { %993 = vst [vmem:[#allocation2 + $0x8] sm:$0xff] %v977_v6  ;;  %v936_v10 = vadd.f32 %v1426_v48, %v1353_v7 }
 0x13d   : > { %v1355_v11 = vpop.f32.mrf.mxu0 }
 0x13e   : > { %v978_v13 = vadd.f32 %v936_v10, %v416_v8  ;;  %v1356_v14 = vadd.f32 %v1355_v11, %v1354_v9 }
 0x13f   : > { %v1357_v15 = vpop.f32.mrf.mxu0 }
 0x140   : > { %994 = vst [vmem:[#allocation2 + $0x48] sm:$0xff] %v978_v13  ;;  %v941_v17 = vadd.f32 %v1356_v14, %v940_v5 }
 0x141   : > { %v1358_v18 = vpop.f32.mrf.mxu0 }
 0x142   : > { %v979_v20 = vadd.f32 %v941_v17, %v417_v16  ;;  %v1359_v21 = vadd.f32 %v1358_v18, %v1357_v15 }
 0x143   : > { %v1360_v22 = vpop.f32.mrf.mxu0 }
 0x144   : > { %995 = vst [vmem:[#allocation2 + $0x40] sm:$0xff] %v979_v20  ;;  %v944_v24 = vadd.f32 %v1359_v21, %v943_v19 }
 0x145   : > { %v1361_v25 = vpop.f32.mrf.mxu0 }
 0x146   : > { %v980_v27 = vadd.f32 %v944_v24, %v418_v23  ;;  %v1362_v28 = vadd.f32 %v1361_v25, %v1360_v22 }
 0x147   : > { %v1363_v30 = vpop.f32.mrf.mxu0 }
 0x148   : > { %996 = vst [vmem:[#allocation2 + $0x20] sm:$0xff] %v980_v27  ;;  %v949_v31 = vadd.f32 %v1429_v62, %v1362_v28  ;;  %v424_v62 = vld [vmem:[#allocation2 + $0x28] sm:$0xff] }
 0x149   : > { %v1364_v32 = vpop.f32.mrf.mxu0 }
 0x14a   : > { %v981_v34 = vadd.f32 %v949_v31, %v419_v29  ;;  %v1365_v35 = vadd.f32 %v1364_v32, %v1363_v30 }
 0x14b   : > { %v1366_v37 = vpop.f32.mrf.mxu0 }
 0x14c   : > { %997 = vst [vmem:[#allocation2 + $0x10] sm:$0xff] %v981_v34  ;;  %v952_v38 = vadd.f32 %v1430_v12, %v1365_v35 }
 0x14d   : > { %v1367_v39 = vpop.f32.mrf.mxu0 }
 0x14e   : > { %v982_v41 = vadd.f32 %v952_v38, %v420_v36  ;;  %v1368_v42 = vadd.f32 %v1367_v39, %v1366_v37 }
 0x14f   : > { %v1369_v43 = vpop.f32.mrf.mxu0 }
 0x150   : > { %998 = vst [vmem:[#allocation2 + $0x38] sm:$0xff] %v982_v41  ;;  %v957_v45 = vadd.f32 %v1368_v42, %v956_v33 }
 0x151   : > { %v1370_v46 = vpop.f32.mrf.mxu0 }
 0x152   : > { %v983_v48 = vadd.f32 %v957_v45, %v421_v44  ;;  %v1371_v49 = vadd.f32 %v1370_v46, %v1369_v43 }
 0x153   : > { %v1372_v50 = vpop.f32.mrf.mxu0 }
 0x154   : > { %999 = vst [vmem:[#allocation2 + $0x60] sm:$0xff] %v983_v48  ;;  %v960_v52 = vadd.f32 %v1371_v49, %v959_v47 }
 0x155   : > { %v1373_v53 = vpop.f32.mrf.mxu0 }
 0x156   : > { %v984_v54 = vadd.f32 %v960_v52, %v422_v51  ;;  %v1374_v55 = vadd.f32 %v1373_v53, %v1372_v50 }
 0x157   : > { %v1375_v57 = vpop.f32.mrf.mxu0 }
 0x158   : > { %1000 = vst [vmem:[#allocation2 + $0x70] sm:$0xff] %v984_v54  ;;  %v965_v58 = vadd.f32 %v1433_v26, %v1374_v55 }
 0x159   : > { %v1376_v59 = vpop.f32.mrf.mxu0 }
 0x15a   : > { %v985_v60 = vadd.f32 %v965_v58, %v423_v56  ;;  %v1377_v61 = vadd.f32 %v1376_v59, %v1375_v57 }
 0x15c   : > { %1001 = vst [vmem:[#allocation2 + $0x78] sm:$0xff] %v985_v60  ;;  %v968_v63 = vadd.f32 %v1434_v40, %v1377_v61  ;;  %1006 = sbr.rel (%p1308_p11) target bundleno = 628 (0x274), region = 74 }
 0x15e   : > { %v986_v0 = vadd.f32 %v968_v63, %v424_v62 }
 0x160   : > { %1002 = vst [vmem:[#allocation2 + $0x28] sm:$0xff] %v986_v0 }
 0x161   : > { %v1807_v3 = vld [vmem:[%s1860_s2] ss:$0 sm:$0xff]  ;;  %v1599_v4 = vmov 0.0   ;;  %v1020_v8 = vld [vmem:[#allocation2 + $0x70] sm:$0xff]  ;;  %vm1600_vm0 = vmmov 0   ;;  %v1601_v9 = vmov 0  }
 0x162   : > { %1435 = vmatprep.subr.bf16.mxu0 %v1599_v4  ;;  %v1019_v7 = vld [vmem:[#allocation2 + $0x60] sm:$0xff]  ;;  %1451 = vmatprep.mubr.msk.bf16.mxu0 %vm1600_vm0, %v1599_v4  ;;  %v1043_v13 = vadd.f32 %v1807_v3, %v1020_v8  ;;  %v1017_v18 = vld [vmem:[#allocation2 + $0x10] sm:$0xff]  ;;  %v1018_v19 = vld [vmem:[#allocation2 + $0x38] sm:$0xff] }
 0x163   : > { %v1021_v1 = vld [vmem:[#allocation2 + $0x78] sm:$0xff]  ;;  %1557 = vset.pattern.permute.xlu0 %v1601_v9  ;;  %v1042_v12 = vadd.f32 %v1807_v3, %v1019_v7  ;;  %v1071_v15 = vld [vmem:[%s1862_s4] sm:$0xff]  ;;  %v1040_v21 = vadd.f32 %v1807_v3, %v1017_v18  ;;  %v1041_v22 = vadd.f32 %v1807_v3, %v1018_v19  ;;  %v1013_v32 = vld [vmem:[#allocation2 + $0x8] sm:$0xff] }
 0x164   : > { %v1044_v5 = vadd.f32 %v1807_v3, %v1021_v1  ;;  %v1059_v17 = vmax.f32 %v1043_v13, 0.0  ;;  %1074 = vperm.xlu0 %1557, %v1071_v15   ;;  %v1015_v25 = vld [vmem:[#allocation2 + $0x40] sm:$0xff]  ;;  %v1014_v33 = vld [vmem:[#allocation2 + $0x48] sm:$0xff]  ;;  %v1036_v35 = vadd.f32 %v1807_v3, %v1013_v32  ;;  %v1011_v39 = vld [vmem:[#allocation2 + $0x50] sm:$0xff] }
 0x165   : > { %v1058_v16 = vmax.f32 %v1042_v12, 0.0  ;;  %v1056_v23 = vmax.f32 %v1040_v21, 0.0  ;;  %v1057_v24 = vmax.f32 %v1041_v22, 0.0  ;;  %v1016_v26 = vld [vmem:[#allocation2 + $0x20] sm:$0xff]  ;;  %v1038_v28 = vadd.f32 %v1807_v3, %v1015_v25  ;;  %v1012_v40 = vld [vmem:[#allocation2 + $0x68] sm:$0xff]  ;;  %v1009_v46 = vld [vmem:[#allocation2 + $0x58] sm:$0xff] }
 0x166   : > { %v1060_v10 = vmax.f32 %v1044_v5, 0.0  ;;  %v1039_v29 = vadd.f32 %v1807_v3, %v1016_v26  ;;  %v1037_v36 = vadd.f32 %v1807_v3, %v1014_v33  ;;  %v1052_v37 = vmax.f32 %v1036_v35, 0.0  ;;  %v1010_v47 = vld [vmem:[#allocation2 + $0x18] sm:$0xff]  ;;  %v1007_v53 = vld [vmem:[#allocation2 + $0x30] sm:$0xff]  ;;  %v1008_v54 = vld [vmem:[#allocation2] sm:$0xff] }
 0x167   : > { %v1022_v2 = vld [vmem:[#allocation2 + $0x28] sm:$0xff]  ;;  %v1069_v20 = vpack.c.bf16 %v1059_v17, %v1058_v16  ;;  %v1068_v27 = vpack.c.bf16 %v1057_v24, %v1056_v23  ;;  %v1054_v30 = vmax.f32 %v1038_v28, 0.0  ;;  %v1034_v42 = vadd.f32 %v1807_v3, %v1011_v39  ;;  %v1062_v61 = vld [vmem:[%s1861_s3] sm:$0xf] }
 0x168   : > { %v1045_v6 = vadd.f32 %v1807_v3, %v1022_v2  ;;  %v1055_v31 = vmax.f32 %v1039_v29, 0.0  ;;  %v1053_v38 = vmax.f32 %v1037_v36, 0.0  ;;  %v1035_v43 = vadd.f32 %v1807_v3, %v1012_v40 }
 0x169   : > { %v1050_v44 = vmax.f32 %v1034_v42, 0.0  ;;  %v1032_v49 = vadd.f32 %v1807_v3, %v1009_v46  ;;  %v1033_v50 = vadd.f32 %v1807_v3, %v1010_v47  ;;  %v1030_v56 = vadd.f32 %v1807_v3, %v1007_v53 }
 0x16a   : > { %v1061_v11 = vmax.f32 %v1045_v6, 0.0  ;;  %v1067_v34 = vpack.c.bf16 %v1055_v31, %v1054_v30  ;;  %v1066_v41 = vpack.c.bf16 %v1053_v38, %v1052_v37  ;;  %v1051_v45 = vmax.f32 %v1035_v43, 0.0 }
 0x16b   : > { %v1048_v51 = vmax.f32 %v1032_v49, 0.0  ;;  %v1049_v52 = vmax.f32 %v1033_v50, 0.0  ;;  %v1031_v57 = vadd.f32 %v1807_v3, %v1008_v54  ;;  %v1046_v58 = vmax.f32 %v1030_v56, 0.0 }
 0x16c   : > { %v1070_v14 = vpack.c.bf16 %v1061_v11, %v1060_v10  ;;  %v1065_v48 = vpack.c.bf16 %v1051_v45, %v1050_v44 }
 0x16d   : > { %v1064_v55 = vpack.c.bf16 %v1049_v52, %v1048_v51  ;;  %v1047_v59 = vmax.f32 %v1031_v57, 0.0 }
 0x16e   : > { %1436 = vmatpush3.bf16.xpose.msra.mxu0 %v1070_v14 }
 0x16f   : > { %1437 = vmatprep.subr.bf16.mxu0 %v1599_v4  ;;  %v1063_v60 = vpack.c.bf16 %v1047_v59, %v1046_v58 }
 0x176   : > { %1438 = vmatpush3.bf16.xpose.msra.mxu0 %v1069_v20 }
 0x177   : > { %1439 = vmatprep.subr.bf16.mxu0 %v1599_v4 }
 0x17e   : > { %1440 = vmatpush3.bf16.xpose.msra.mxu0 %v1068_v27 }
 0x17f   : > { %1441 = vmatprep.subr.bf16.mxu0 %v1599_v4 }
 0x186   : > { %1442 = vmatpush3.bf16.xpose.msra.mxu0 %v1067_v34 }
 0x187   : > { %1443 = vmatprep.subr.bf16.mxu0 %v1599_v4 }
 0x18e   : > { %1444 = vmatpush3.bf16.xpose.msra.mxu0 %v1066_v41 }
 0x18f   : > { %1445 = vmatprep.subr.bf16.mxu0 %v1599_v4 }
 0x196   : > { %1446 = vmatpush3.bf16.xpose.msra.mxu0 %v1065_v48 }
 0x197   : > { %1447 = vmatprep.subr.bf16.mxu0 %v1599_v4 }
 0x19e   : > { %1448 = vmatpush3.bf16.xpose.msra.mxu0 %v1064_v55 }
 0x19f   : > { %1449 = vmatprep.subr.bf16.mxu0 %v1599_v4 }
 0x1a6   : > { %1450 = vmatpush3.bf16.xpose.msra.mxu0 %v1063_v60 }
 0x1ad   : > { %1452 = vmatmul.mubr.bf16.vlgmr.msra.gmra.mxu0 %v1062_v61 }
 0x1df   : > { %v1075_v62 = vpop.permute.xlu0 %1074 }
 0x26d   : > { %v1111_v63 = vpop.f32.mrf.mxu0 }
 0x26e   : > { %v1112_v0 = vadd.f32 %v1111_v63, %v1075_v62 }
 0x26f   : > { %v1453_v1 = vpop.f32.mrf.mxu0 }
 0x270   : > { %1117 = vst [vmem:[%s1863_s5] sm:$0xff] %v1112_v0 }
 0x271   : > { %v1114_v2 = vpop.f32.mrf.mxu0 }
 0x273   : > { %v1454_v3 = vpop.f32.mrf.mxu0 }
 0x274 PF: > { %s15_s22 = sadd.s32 1, %s1596_s22   ;;  %s1864_s18 = smov %s1584_s19 }
 0x275   : > { %p12_p12 = scmp.ge.s32.totalorder %s15_s22, 5   ;;  %s1865_s19 = smov %s1667_s26 }
 0x276   : > { %s1866_s20 = smov %s1592_s21  ;;  %s1867_s21 = smov %s1869_s23 }
 0x277   :  { %14 = sbr.rel (!%p12_p12) target bundleno = 3 (0x3), region = 121 }

</bundles_post_ra>
